<compile_context>
chip_gen: v7x
topology: tpu7x:2x2x1
jax: 0.10.0
libtpu: 0.0.40
codegen_flags: <defaults>
</compile_context>

<pallas_src>
import jax
import jax.numpy as jnp
from jax.experimental import pallas as pl
from jax.experimental.pallas import tpu as pltpu


def _round_up(x, m):
    return (x + m - 1) // m * m


def _weak_classifier_kernel(x_ref, w_ref, o_ref):
    # x_ref: (TB, D) VMEM, w_ref: (1, D) VMEM, o_ref: (1, TB) VMEM.
    # Contract over D (last dim of both operands) -> lane-dense (1, TB) logits row.
    r = jax.lax.dot_general(
        w_ref[...], x_ref[...],
        dimension_numbers=(((1,), (1,)), ((), ())),
        preferred_element_type=jnp.float32,
    )
    o_ref[...] = r.astype(o_ref.dtype)


def weak_classifier_forward(x, weight, bias, *, max_tile=512,
                            vmem_budget_bytes=16 << 20):
    """Pallas equivalent of nn.Linear(input_dim, 1) forward.

    x:      (B, D) float32
    weight: (1, D) float32  (PyTorch Linear weight layout)
    bias:   (1,)   float32
    returns (B, 1) float32
    """
    B, D = x.shape
    itemsize = jnp.dtype(x.dtype).itemsize

    # Budget cap for the double-buffered (TB, D) input tile.  Keep TB a multiple
    # of 128 so multi-tile blocks are legal both as a sublane dim (input block)
    # and as a lane dim (lane-dense output block).
    cap = max(128, (vmem_budget_bytes // (2 * D * itemsize)) // 128 * 128)
    tile = min(max_tile, cap)
    b8 = _round_up(B, 8)
    TB = b8 if b8 <= tile else tile          # small B: single full-extent tile
    B_pad = _round_up(B, TB)
    num_tiles = B_pad // TB

    x_p = x if B_pad == B else jnp.pad(x, ((0, B_pad - B), (0, 0)))
    w_row = weight.reshape(1, D).astype(x.dtype)

    logits_row = pl.pallas_call(
        _weak_classifier_kernel,
        out_shape=jax.ShapeDtypeStruct((1, B_pad), jnp.float32),
        grid_spec=pltpu.PrefetchScalarGridSpec(
            num_scalar_prefetch=0,
            grid=(num_tiles,),
            in_specs=[
                pl.BlockSpec((TB, D), lambda i: (i, 0)),   # pipelined batch tile of x
                pl.BlockSpec((1, D), lambda i: (0, 0)),    # weight row, VMEM-resident
            ],
            out_specs=pl.BlockSpec((1, TB), lambda i: (0, i)),  # lane-dense logits
        ),
        compiler_params=pltpu.CompilerParams(
            dimension_semantics=("parallel",),
        ),
    )(x_p, w_row)

    # Bias add + final (B, 1) shape in the wrapper (scalar add is free; avoids a
    # padded (1, 1) VMEM tile and an extra DMA stream).
    out = logits_row.reshape(B_pad)[:B].reshape(B, 1) + bias.reshape(1, 1)
    return out.astype(x.dtype)


if __name__ == "__main__":
    key = jax.random.PRNGKey(0)
    k_x, k_w, k_b, k_x2 = jax.random.split(key, 4)

    batch, input_dim = 8, 32

    # Deterministic "PyTorch-like" init: U(-1/sqrt(in), 1/sqrt(in))
    bound = 1.0 / jnp.sqrt(jnp.float32(input_dim))
    weight = jax.random.uniform(k_w, (1, input_dim), jnp.float32, -bound, bound)
    bias = jax.random.uniform(k_b, (1,), jnp.float32, -bound, bound)

    x = jax.random.normal(k_x, (batch, input_dim), jnp.float32)

    out = jax.block_until_ready(weak_classifier_forward(x, weight, bias))
    ref = x @ weight.T + bias
    assert out.shape == (batch, 1)
    assert jnp.allclose(out, ref, atol=1e-4, rtol=1e-4)

    # Also exercise the multi-tile (pipelined + padded) path: B=600 -> TB=512, grid=2.
    x2 = jax.random.normal(k_x2, (600, input_dim), jnp.float32)
    out2 = jax.block_until_ready(weak_classifier_forward(x2, weight, bias))
    ref2 = x2 @ weight.T + bias
    assert out2.shape == (600, 1)
    assert jnp.allclose(out2, ref2, atol=1e-4, rtol=1e-4)

    print("KERNEL_OK")
</pallas_src>

<mosaic_0001>
module attributes {stable_mosaic.version = 11 : i64} {
  func.func @_weak_classifier_kernel(%arg0: i32, %arg1: memref<8x32xf32, #tpu.memory_space<vmem>>, %arg2: memref<1x32xf32, #tpu.memory_space<vmem>>, %arg3: memref<1x8xf32, #tpu.memory_space<vmem>>) attributes {dimension_semantics = [#tpu.dimension_semantics<parallel>], iteration_bounds = array<i64: 1>, scalar_prefetch = 0 : i64, scratch_operands = 0 : i64, tpu.core_type = #tpu.core_type<tc>, window_params = [{transform_indices = @transform_0, window_bounds = array<i64: 8, 32>}, {pipeline_mode = #tpu.pipeline_mode<synchronous>, transform_indices = @transform_1, window_bounds = array<i64: 1, 32>}, {transform_indices = @transform_2, window_bounds = array<i64: 1, 8>}]} {
    %c0 = arith.constant 0 : index
    %c0_0 = arith.constant 0 : index
    %0 = vector.load %arg2[%c0, %c0_0] : memref<1x32xf32, #tpu.memory_space<vmem>>, vector<1x32xf32>
    %c0_1 = arith.constant 0 : index
    %c0_2 = arith.constant 0 : index
    %1 = vector.load %arg1[%c0_1, %c0_2] : memref<8x32xf32, #tpu.memory_space<vmem>>, vector<8x32xf32>
    %cst = arith.constant dense<0.000000e+00> : vector<1x8xf32>
    %2 = tpu.matmul %0, %1, %cst {dimension_numbers = #tpu.dot_dimension_numbers<[1], [1], [0], [0], [0, 0, 1, 0], [], []>} : vector<1x32xf32>, vector<8x32xf32>, vector<1x8xf32> -> vector<1x8xf32>
    %c0_3 = arith.constant 0 : index
    %c0_4 = arith.constant 0 : index
    %3 = vector.load %arg3[%c0_3, %c0_4] : memref<1x8xf32, #tpu.memory_space<vmem>>, vector<1x8xf32>
    tpu.vector_store %arg3[%c0_3, %c0_4], %2 {strides = array<i32>} : memref<1x8xf32, #tpu.memory_space<vmem>>, vector<1x8xf32>,
    return
  }
  func.func @transform_0(%arg0: i32) -> (i32, i32) {
    %c0_i32 = arith.constant 0 : i32
    %c0_i32_0 = arith.constant 0 : i32
    return %arg0, %c0_i32 : i32, i32
  }
  func.func @transform_1(%arg0: i32) -> (i32, i32) {
    %c0_i32 = arith.constant 0 : i32
    %c0_i32_0 = arith.constant 0 : i32
    %c0_i32_1 = arith.constant 0 : i32
    return %c0_i32, %c0_i32_0 : i32, i32
  }
  func.func @transform_2(%arg0: i32) -> (i32, i32) {
    %c0_i32 = arith.constant 0 : i32
    %c0_i32_0 = arith.constant 0 : i32
    return %c0_i32, %arg0 : i32, i32
  }
}

</mosaic_0001>

<bundles_post_ra>
// kernel: tpu_custom_call.1
= control target key start
LH: loop header
LB: loop body
LE: loop exit
PB: predicated region body
PF: predicated region fallthrough
CT: control target
= control target key end

     0   :  { %7 = vsyncpa [#allocation3], 0  ;;  %s227_s0 = inlined_call_operand.hbm [shape: f32[8,32], index: 0, kind: input, shape index: {}]   ;;  %s228_s1 = inlined_call_operand.vmem [shape: f32[1,32], index: 1, kind: input, shape index: {}]   ;;  %s229_s2 = inlined_call_operand.hbm [shape: f32[1,8], index: 2, kind: output, shape index: {}]  }
   0x1   :  { %8 = vsyncpa [#allocation4], 0  ;;  %s181_s9 = smov [#allocation2]   ;;  %s133_s13 = scalar_lea.hbm %s227_s0, 128 }
   0x2   :  { %s15_s10 = sshll.u32 %s181_s9, 4  ;;  %p134_p0 = scmp.ne.s32.totalorder %s227_s0, %s133_s13  ;;  %s16_s10 = int_to_ptr.vmem [resolvable:$true] %s15_s10 }
   0x3   :  { %p137_p1 = scmp.lt.u32.totalorder %s133_s13, %s227_s0 }
   0x5   :  { %p139_p2 = pnand %p137_p1, %p134_p0 }
   0x7   :  { %142 = shalt.err (!%p139_p2)
}
   0x8   :  { %s143_s18 = scalar_lea.vmem %s16_s10, 128  ;;  %p148_p4 = scmp.lt.s32.totalorder %s16_s10, %s16_s10 }
   0x9   :  { %p144_p3 = scmp.ne.s32.totalorder %s16_s10, %s143_s18  ;;  %p149_p5 = scmp.lt.s32.totalorder %s143_s18, %s143_s18 }
   0xb   :  { %p150_p6 = por %p149_p5, %p148_p4 }
   0xd   :  { %p151_p7 = pnand %p150_p6, %p144_p3 }
   0xf   :  { %154 = shalt.err (!%p151_p7)
}
  0x10   :  { %18 = dma.hbm_to_vmem [thread:$0]  %s227_s0, 128, %s16_s10, [#allocation3]  }
  0x11   :  { %177 = dma.done.wait [#allocation3], 128  }
  0x12   :  { %178 = vsyncadd [#allocation3], 4294967168  ;;  %v182_v0 = vmov 0.0   ;;  %vm183_vm0 = vmmov 0   ;;  %vm26_vm1 = vcmask 261120   ;;  %v25_v1 = vld [vmem:[#allocation2] sm:$0xff] }
  0x13   :  { %124 = vmatprep.subr.mxu0 %v182_v0  ;;  %126 = vmatprep.mubr.msk.f32.mxu0 %vm183_vm0, %v182_v0  ;;  %v24_v2 = vld [vmem:[%s228_s1] sm:$0x1]  ;;  %s184_s23 = smov [#allocation5]   ;;  %vm103_vm2 = vcmask 57344  }
  0x14   :  { %125 = vmatpush3.xpose.msk.msra.mxu0 %vm26_vm1, %v25_v1  ;;  %s111_s24 = sshll.u32 %s184_s23, 4  ;;  %s112_s24 = int_to_ptr.vmem [resolvable:$true] %s111_s24 }
  0x15   :  { %s155_s0 = scalar_lea.vmem %s112_s24, 16  ;;  %s159_s25 = scalar_lea.vmem %s112_s24, 32 }
  0x16   :  { %p156_p8 = scmp.ne.s32.totalorder %s112_s24, %s155_s0  ;;  %p160_p9 = scmp.lt.s32.totalorder %s112_s24, %s112_s24 }
  0x17   :  { %127 = vmatmul.mubr.msk.f32.vlgmr.msra.gmra.mrb[0].mxu0 %vm26_vm1, %v24_v2  ;;  %p161_p10 = scmp.lt.s32.totalorder %s159_s25, %s155_s0 }
  0x19   :  { %p162_p11 = por %p161_p10, %p160_p9 }
  0x1b   :  { %p163_p12 = pnand %p162_p11, %p156_p8 }
  0xea   :  { %v99_v3 = vpop.f32.mrb[0].mxu0 }
  0xeb   :  { %v128_v4 = vpop.f32.mrb[1].mxu0  ;;  %104 = vst.msk [vmem:[#allocation5] sm:$0x1] %vm103_vm2, %v99_v3 }
  0xec   :  { %166 = shalt.err (!%p163_p12)
}
  0xed   :  { %s167_s1 = scalar_lea.hbm %s229_s2, 16 }
  0xee   :  { %p168_p13 = scmp.ne.s32.totalorder %s229_s2, %s167_s1  ;;  %p171_p0 = scmp.lt.u32.totalorder %s167_s1, %s229_s2 }
  0xf0   :  { %p173_p1 = pnand %p171_p0, %p168_p13 }
  0xf2   :  { %176 = shalt.err (!%p173_p1)
}
  0xf3   :  { %114 = dma.vmem_to_hbm [thread:$0]  %s112_s24, 16, %s229_s2, [#allocation4]  }
  0xf4   :  { %179 = dma.done.wait [#allocation4], 16  }
  0xf5   :  { %180 = vsyncadd [#allocation4], 4294967280 }
  0xf6   :  { %118 = vsyncpa [#allocation3], 1 }
  0xf7   :  { %119 = vsyncpa [#allocation4], 1 }

</bundles_post_ra>
